<compile_context>
chip_gen: v6e
topology: v6e:2x2x1
jax: 0.10.0
libtpu: 0.0.40
codegen_flags: <defaults>
</compile_context>

<pallas_src>
import functools

import jax
import jax.numpy as jnp
from jax.experimental import pallas as pl
from jax.experimental.pallas import tpu as pltpu

NUM_LAYERS = 4
VMEM_LIMIT = 32 * 1024 * 1024  # safe default on v5e/v6e/v7x


# ----------------------------------------------------------------------------
# Recurrent kernel: 4 stacked LSTM cells, state carried across grid steps.
# ----------------------------------------------------------------------------
def lstm_recurrent_kernel(g0_ref, h0_ref, c0_ref, whh0_ref, wf_ref, br_ref,
                          h3_ref, hout_ref, cout_ref, h_s, c_s):
    t = pl.program_id(0)
    H = h0_ref.shape[-1]

    @pl.when(t == 0)
    def _():
        h_s[...] = h0_ref[...]
        c_s[...] = c0_ref[...]

    def apply_gates(gates, c_prev):
        i_g = jax.nn.sigmoid(gates[:, 0 * H:1 * H])
        f_g = jax.nn.sigmoid(gates[:, 1 * H:2 * H])
        g_g = jnp.tanh(gates[:, 2 * H:3 * H])
        o_g = jax.nn.sigmoid(gates[:, 3 * H:4 * H])
        c_new = f_g * c_prev + i_g * g_g
        h_new = o_g * jnp.tanh(c_new)
        return h_new, c_new

    # Layer 0: input-side gates precomputed outside the recurrence (gates0 already
    # includes x @ W_ih[0] + b[0]); only the recurrent matmul remains here.
    gates = g0_ref[0] + jnp.dot(h_s[0], whh0_ref[...],
                                preferred_element_type=jnp.float32)
    h_new, c_new = apply_gates(gates, c_s[0])
    h_s[0] = h_new
    c_s[0] = c_new
    x = h_new

    # Layers 1..3: single fused matmul per layer: [x, h_l] @ [W_ih; W_hh] + b.
    for l in range(1, NUM_LAYERS):
        xh = jnp.concatenate([x, h_s[l]], axis=-1)                      # (B, 2H)
        gates = (jnp.dot(xh, wf_ref[l - 1], preferred_element_type=jnp.float32)
                 + br_ref[l - 1])                                        # (B, 4H)
        h_new, c_new = apply_gates(gates, c_s[l])
        h_s[l] = h_new
        c_s[l] = c_new
        x = h_new

    h3_ref[0] = x  # top-layer hidden state for this step

    @pl.when(t == pl.num_programs(0) - 1)
    def _():
        hout_ref[...] = h_s[...]
        cout_ref[...] = c_s[...]


# ----------------------------------------------------------------------------
# Classifier kernel: batched Linear + LogSoftmax over all T*B rows.
# ----------------------------------------------------------------------------
def classifier_kernel(h_ref, wc_ref, bc_ref, out_ref):
    logits = (jnp.dot(h_ref[...], wc_ref[...], preferred_element_type=jnp.float32)
              + bc_ref[...])                                             # (TM, V)
    m = jnp.max(logits, axis=-1, keepdims=True)
    lse = jnp.log(jnp.sum(jnp.exp(logits - m), axis=-1, keepdims=True)) + m
    out_ref[...] = logits - lse


# ----------------------------------------------------------------------------
# Wrapper (jit'd; max_len is static)
# ----------------------------------------------------------------------------
@functools.partial(jax.jit, static_argnums=(0,))
def decoder_forward(max_len, tgt, state, params):
    """Teacher-forcing decoder forward (ar=True, tf=True)."""
    emb, wih, whh, b, wc, bc = (params["emb"], params["wih"], params["whh"],
                                params["b"], params["wc"], params["bc"])
    h0, c0 = state
    L, B, H = h0.shape
    V = wc.shape[1]
    T = max_len

    # Step tokens are fully known under teacher forcing; embedding gather is glue.
    eos_tok = jnp.full((B,), 2, dtype=jnp.int32)
    tokens = jnp.concatenate([eos_tok[None, :], tgt[:, :T - 1].T], axis=0)   # (T, B)
    x_seq = emb[tokens]                                                      # (T, B, H)

    # Pad batch to a sublane multiple (>= 8); padded rows are discarded at the end.
    Bp = max(8, ((B + 7) // 8) * 8)
    pad = Bp - B
    if pad:
        x_seq = jnp.pad(x_seq, ((0, 0), (0, pad), (0, 0)))
        h0p = jnp.pad(h0, ((0, 0), (0, pad), (0, 0)))
        c0p = jnp.pad(c0, ((0, 0), (0, pad), (0, 0)))
    else:
        h0p, c0p = h0, c0

    # Hoisted layer-0 input projection: one big (T*Bp, H) @ (H, 4H) GEMM.
    gates0 = (x_seq.reshape(T * Bp, H) @ wih[0] + b[0]).reshape(T, Bp, 4 * H)

    # Fused input+recurrent weights for layers 1..3.
    wfused = jnp.concatenate([wih[1:], whh[1:]], axis=1)   # (L-1, 2H, 4H)
    whh0 = whh[0]                                          # (H, 4H)
    b_rest = b[1:, None, :]                                # (L-1, 1, 4H)

    const3 = lambda s: pl.BlockSpec(s, lambda t: (0, 0, 0))
    const2 = lambda s: pl.BlockSpec(s, lambda t: (0, 0))

    h3_seq, h_out, c_out = pl.pallas_call(
        lstm_recurrent_kernel,
        out_shape=(jax.ShapeDtypeStruct((T, Bp, H), jnp.float32),
                   jax.ShapeDtypeStruct((L, Bp, H), jnp.float32),
                   jax.ShapeDtypeStruct((L, Bp, H), jnp.float32)),
        grid=(T,),
        in_specs=[
            pl.BlockSpec((1, Bp, 4 * H), lambda t: (t, 0, 0)),   # gates0, stepped over T
            const3((L, Bp, H)),                                  # h0
            const3((L, Bp, H)),                                  # c0
            const2((H, 4 * H)),                                  # W_hh[0]
            const3((L - 1, 2 * H, 4 * H)),                       # fused W layers 1..3
            const3((L - 1, 1, 4 * H)),                           # b layers 1..3
        ],
        out_specs=[
            pl.BlockSpec((1, Bp, H), lambda t: (t, 0, 0)),       # per-step top-layer h
            const3((L, Bp, H)),                                  # final h (resident)
            const3((L, Bp, H)),                                  # final c (resident)
        ],
        scratch_shapes=[pltpu.VMEM((L, Bp, H), jnp.float32),
                        pltpu.VMEM((L, Bp, H), jnp.float32)],
        compiler_params=pltpu.CompilerParams(
            dimension_semantics=("arbitrary",),
            vmem_limit_bytes=VMEM_LIMIT),
    )(gates0, h0p, c0p, whh0, wfused, b_rest)

    # Batched classifier over all T*Bp rows (N is a static multiple of 8).
    N = T * Bp
    if N % 512 == 0:
        TM = 512
    elif N % 256 == 0:
        TM = 256
    elif N % 128 == 0:
        TM = 128
    else:
        TM = N

    logp = pl.pallas_call(
        classifier_kernel,
        out_shape=jax.ShapeDtypeStruct((N, V), jnp.float32),
        grid=(N // TM,),
        in_specs=[
            pl.BlockSpec((TM, H), lambda i: (i, 0)),
            pl.BlockSpec((H, V), lambda i: (0, 0)),
            pl.BlockSpec((1, V), lambda i: (0, 0)),
        ],
        out_specs=pl.BlockSpec((TM, V), lambda i: (i, 0)),
        compiler_params=pltpu.CompilerParams(
            dimension_semantics=("parallel",),
            vmem_limit_bytes=VMEM_LIMIT),
    )(h3_seq.reshape(N, H), wc, bc)

    out = logp.reshape(T, Bp, V)[:, :B]
    return out, (h_out[:, :B], c_out[:, :B])


# ----------------------------------------------------------------------------
# Pure-JAX reference (mirrors the PyTorch module, ar=True / tf=True mode)
# ----------------------------------------------------------------------------
def decoder_reference(max_len, tgt, state, params):
    emb, wih, whh, b, wc, bc = (params["emb"], params["wih"], params["whh"],
                                params["b"], params["wc"], params["bc"])
    h, c = state[0], state[1]
    L, B, H = h.shape
    outs = []
    for i in range(max_len):
        if i == 0:
            x = emb[jnp.full((B,), 2, dtype=jnp.int32)]
        else:
            x = emb[tgt[:, i - 1]]
        new_h, new_c = [], []
        for l in range(L):
            gates = x @ wih[l] + h[l] @ whh[l] + b[l]
            i_g = jax.nn.sigmoid(gates[:, 0 * H:1 * H])
            f_g = jax.nn.sigmoid(gates[:, 1 * H:2 * H])
            g_g = jnp.tanh(gates[:, 2 * H:3 * H])
            o_g = jax.nn.sigmoid(gates[:, 3 * H:4 * H])
            cn = f_g * c[l] + i_g * g_g
            hn = o_g * jnp.tanh(cn)
            new_h.append(hn)
            new_c.append(cn)
            x = hn
        h = jnp.stack(new_h, 0)
        c = jnp.stack(new_c, 0)
        logits = h[L - 1] @ wc + bc
        outs.append(jax.nn.log_softmax(logits, axis=-1))
    return jnp.stack(outs, 0), (h, c)


def make_params(key, vocab_size, hidden_size):
    H, V, L = hidden_size, vocab_size, NUM_LAYERS
    ks = jax.random.split(key, 8)
    k = 1.0 / jnp.sqrt(H)
    u = lambda kk, shape: jax.random.uniform(kk, shape, jnp.float32, -k, k)
    return {
        "emb": jax.random.normal(ks[0], (V, H), jnp.float32),
        "wih": u(ks[1], (L, H, 4 * H)),
        "whh": u(ks[2], (L, H, 4 * H)),
        "b":   u(ks[3], (L, 4 * H)) + u(ks[4], (L, 4 * H)),   # b_ih + b_hh
        "wc":  u(ks[5], (H, V)),
        "bc":  u(ks[6], (1, V)),
    }


if __name__ == "__main__":
    vocab_size, hidden_size, B, max_len = 32, 32, 2, 8

    key = jax.random.PRNGKey(0)
    kp, kh, kc, kt = jax.random.split(key, 4)
    params = make_params(kp, vocab_size, hidden_size)
    h0 = jax.random.normal(kh, (NUM_LAYERS, B, hidden_size), jnp.float32)
    c0 = jax.random.normal(kc, (NUM_LAYERS, B, hidden_size), jnp.float32)
    tgt = jax.random.randint(kt, (B, max_len), 0, vocab_size, jnp.int32)

    out, (h_f, c_f) = decoder_forward(max_len, tgt, (h0, c0), params)
    jax.block_until_ready((out, h_f, c_f))

    out_r, (h_r, c_r) = decoder_reference(max_len, tgt, (h0, c0), params)
    assert jnp.allclose(out, out_r, atol=1e-4, rtol=1e-4)
    assert jnp.allclose(h_f, h_r, atol=1e-4, rtol=1e-4)
    assert jnp.allclose(c_f, c_r, atol=1e-4, rtol=1e-4)

    print("KERNEL_OK")
</pallas_src>

<mosaic_0001>
module attributes {stable_mosaic.version = 11 : i64} {
  func.func @classifier_kernel(%arg0: i32, %arg1: memref<64x32xf32, #tpu.memory_space<vmem>>, %arg2: memref<32x32xf32, #tpu.memory_space<vmem>>, %arg3: memref<1x32xf32, #tpu.memory_space<vmem>>, %arg4: memref<64x32xf32, #tpu.memory_space<vmem>>) attributes {dimension_semantics = [#tpu.dimension_semantics<parallel>], iteration_bounds = array<i64: 1>, scalar_prefetch = 0 : i64, scratch_operands = 0 : i64, tpu.core_type = #tpu.core_type<tc>, window_params = [{transform_indices = @transform_0, window_bounds = array<i64: 64, 32>}, {pipeline_mode = #tpu.pipeline_mode<synchronous>, transform_indices = @transform_1, window_bounds = array<i64: 32, 32>}, {pipeline_mode = #tpu.pipeline_mode<synchronous>, transform_indices = @transform_2, window_bounds = array<i64: 1, 32>}, {transform_indices = @transform_3, window_bounds = array<i64: 64, 32>}]} {
    %c0 = arith.constant 0 : index
    %c0_0 = arith.constant 0 : index
    %0 = vector.load %arg1[%c0, %c0_0] : memref<64x32xf32, #tpu.memory_space<vmem>>, vector<64x32xf32>
    %c0_1 = arith.constant 0 : index
    %c0_2 = arith.constant 0 : index
    %1 = vector.load %arg2[%c0_1, %c0_2] : memref<32x32xf32, #tpu.memory_space<vmem>>, vector<32x32xf32>
    %cst = arith.constant dense<0.000000e+00> : vector<64x32xf32>
    %2 = tpu.matmul %0, %1, %cst {dimension_numbers = #tpu.dot_dimension_numbers<[1], [0], [0], [1], [0, 0, 1, 1], [], []>} : vector<64x32xf32>, vector<32x32xf32>, vector<64x32xf32> -> vector<64x32xf32>
    %c0_3 = arith.constant 0 : index
    %c0_4 = arith.constant 0 : index
    %3 = vector.load %arg3[%c0_3, %c0_4] : memref<1x32xf32, #tpu.memory_space<vmem>>, vector<1x32xf32>
    %4 = vector.broadcast %3 : vector<1x32xf32> to vector<64x32xf32>
    %5 = arith.addf %2, %4 : vector<64x32xf32>
    %cst_5 = arith.constant dense<0xFF800000> : vector<64xf32>
    %6 = vector.multi_reduction <maximumf>, %5, %cst_5 [1] : vector<64x32xf32> to vector<64xf32>
    %7 = vector.shape_cast %6 : vector<64xf32> to vector<64x1xf32>
    %8 = vector.broadcast %7 : vector<64x1xf32> to vector<64x32xf32>
    %9 = arith.subf %5, %8 : vector<64x32xf32>
    %10 = math.exp %9 : vector<64x32xf32>
    %cst_6 = arith.constant dense<0.000000e+00> : vector<64xf32>
    %11 = vector.multi_reduction <add>, %10, %cst_6 [1] : vector<64x32xf32> to vector<64xf32>
    %12 = vector.shape_cast %11 : vector<64xf32> to vector<64x1xf32>
    %13 = math.log %12 : vector<64x1xf32>
    %14 = arith.addf %13, %7 : vector<64x1xf32>
    %15 = vector.broadcast %14 : vector<64x1xf32> to vector<64x32xf32>
    %16 = arith.subf %5, %15 : vector<64x32xf32>
    %c0_7 = arith.constant 0 : index
    %c0_8 = arith.constant 0 : index
    %17 = vector.load %arg4[%c0_7, %c0_8] : memref<64x32xf32, #tpu.memory_space<vmem>>, vector<64x32xf32>
    tpu.vector_store %arg4[%c0_7, %c0_8], %16 {strides = array<i32>} : memref<64x32xf32, #tpu.memory_space<vmem>>, vector<64x32xf32>,
    return
  }
  func.func @transform_0(%arg0: i32) -> (i32, i32) {
    %c0_i32 = arith.constant 0 : i32
    %c0_i32_0 = arith.constant 0 : i32
    return %arg0, %c0_i32 : i32, i32
  }
  func.func @transform_1(%arg0: i32) -> (i32, i32) {
    %c0_i32 = arith.constant 0 : i32
    %c0_i32_0 = arith.constant 0 : i32
    %c0_i32_1 = arith.constant 0 : i32
    return %c0_i32, %c0_i32_0 : i32, i32
  }
  func.func @transform_2(%arg0: i32) -> (i32, i32) {
    %c0_i32 = arith.constant 0 : i32
    %c0_i32_0 = arith.constant 0 : i32
    %c0_i32_1 = arith.constant 0 : i32
    return %c0_i32, %c0_i32_0 : i32, i32
  }
  func.func @transform_3(%arg0: i32) -> (i32, i32) {
    %c0_i32 = arith.constant 0 : i32
    %c0_i32_0 = arith.constant 0 : i32
    return %arg0, %c0_i32 : i32, i32
  }
}

module attributes {stable_mosaic.version = 11 : i64} {
  func.func @lstm_recurrent_kernel(%arg0: i32, %arg1: memref<1x8x128xf32, #tpu.memory_space<vmem>>, %arg2: memref<4x8x32xf32, #tpu.memory_space<vmem>>, %arg3: memref<4x8x32xf32, #tpu.memory_space<vmem>>, %arg4: memref<32x128xf32, #tpu.memory_space<vmem>>, %arg5: memref<3x64x128xf32, #tpu.memory_space<vmem>>, %arg6: memref<3x1x128xf32, #tpu.memory_space<vmem>>, %arg7: memref<1x8x32xf32, #tpu.memory_space<vmem>>, %arg8: memref<4x8x32xf32, #tpu.memory_space<vmem>>, %arg9: memref<4x8x32xf32, #tpu.memory_space<vmem>>, %arg10: memref<4x8x32xf32, #tpu.memory_space<vmem>>, %arg11: memref<4x8x32xf32, #tpu.memory_space<vmem>>) attributes {dimension_semantics = [#tpu.dimension_semantics<arbitrary>], iteration_bounds = array<i64: 8>, scalar_prefetch = 0 : i64, scratch_operands = 2 : i64, tpu.core_type = #tpu.core_type<tc>, window_params = [{transform_indices = @transform_0, window_bounds = array<i64: 1, 8, 128>}, {pipeline_mode = #tpu.pipeline_mode<synchronous>, transform_indices = @transform_1, window_bounds = array<i64: 4, 8, 32>}, {pipeline_mode = #tpu.pipeline_mode<synchronous>, transform_indices = @transform_2, window_bounds = array<i64: 4, 8, 32>}, {pipeline_mode = #tpu.pipeline_mode<synchronous>, transform_indices = @transform_3, window_bounds = array<i64: 32, 128>}, {pipeline_mode = #tpu.pipeline_mode<synchronous>, transform_indices = @transform_4, window_bounds = array<i64: 3, 64, 128>}, {pipeline_mode = #tpu.pipeline_mode<synchronous>, transform_indices = @transform_5, window_bounds = array<i64: 3, 1, 128>}, {transform_indices = @transform_6, window_bounds = array<i64: 1, 8, 32>}, {pipeline_mode = #tpu.pipeline_mode<synchronous>, transform_indices = @transform_7, window_bounds = array<i64: 4, 8, 32>}, {pipeline_mode = #tpu.pipeline_mode<synchronous>, transform_indices = @transform_8, window_bounds = array<i64: 4, 8, 32>}]} {
    %c0_i32 = arith.constant 0 : i32
    %0 = arith.cmpi eq, %arg0, %c0_i32 : i32
    %1 = arith.extui %0 : i1 to i32
    %c0_i32_0 = arith.constant 0 : i32
    %2 = arith.cmpi ne, %1, %c0_i32_0 : i32
    scf.if %2 {
      %c0_87 = arith.constant 0 : index
      %c0_88 = arith.constant 0 : index
      %c0_89 = arith.constant 0 : index
      %178 = vector.load %arg2[%c0_87, %c0_88, %c0_89] : memref<4x8x32xf32, #tpu.memory_space<vmem>>, vector<4x8x32xf32>
      %c0_90 = arith.constant 0 : index
      %c0_91 = arith.constant 0 : index
      %c0_92 = arith.constant 0 : index
      %179 = vector.load %arg10[%c0_90, %c0_91, %c0_92] : memref<4x8x32xf32, #tpu.memory_space<vmem>>, vector<4x8x32xf32>
      tpu.vector_store %arg10[%c0_90, %c0_91, %c0_92], %178 {strides = array<i32>} : memref<4x8x32xf32, #tpu.memory_space<vmem>>, vector<4x8x32xf32>,
      %c0_93 = arith.constant 0 : index
      %c0_94 = arith.constant 0 : index
      %c0_95 = arith.constant 0 : index
      %180 = vector.load %arg3[%c0_93, %c0_94, %c0_95] : memref<4x8x32xf32, #tpu.memory_space<vmem>>, vector<4x8x32xf32>
      %c0_96 = arith.constant 0 : index
      %c0_97 = arith.constant 0 : index
      %c0_98 = arith.constant 0 : index
      %181 = vector.load %arg11[%c0_96, %c0_97, %c0_98] : memref<4x8x32xf32, #tpu.memory_space<vmem>>, vector<4x8x32xf32>
      tpu.vector_store %arg11[%c0_96, %c0_97, %c0_98], %180 {strides = array<i32>} : memref<4x8x32xf32, #tpu.memory_space<vmem>>, vector<4x8x32xf32>,
    } else {
    }
    %c0 = arith.constant 0 : index
    %c0_1 = arith.constant 0 : index
    %c0_2 = arith.constant 0 : index
    %3 = vector.load %arg1[%c0, %c0_1, %c0_2] : memref<1x8x128xf32, #tpu.memory_space<vmem>>, vector<1x8x128xf32>
    %4 = vector.shape_cast %3 : vector<1x8x128xf32> to vector<8x128xf32>
    %c0_3 = arith.constant 0 : index
    %c0_4 = arith.constant 0 : index
    %c0_5 = arith.constant 0 : index
    %5 = vector.load %arg10[%c0_3, %c0_4, %c0_5] : memref<4x8x32xf32, #tpu.memory_space<vmem>>, vector<1x8x32xf32>
    %6 = vector.shape_cast %5 : vector<1x8x32xf32> to vector<8x32xf32>
    %c0_6 = arith.constant 0 : index
    %c0_7 = arith.constant 0 : index
    %7 = vector.load %arg4[%c0_6, %c0_7] : memref<32x128xf32, #tpu.memory_space<vmem>>, vector<32x128xf32>
    %cst = arith.constant dense<0.000000e+00> : vector<8x128xf32>
    %8 = tpu.matmul %6, %7, %cst {dimension_numbers = #tpu.dot_dimension_numbers<[1], [0], [0], [1], [0, 0, 1, 1], [], []>} : vector<8x32xf32>, vector<32x128xf32>, vector<8x128xf32> -> vector<8x128xf32>
    %9 = arith.addf %4, %8 : vector<8x128xf32>
    %c0_8 = arith.constant 0 : index
    %c0_9 = arith.constant 0 : index
    %c0_10 = arith.constant 0 : index
    %10 = vector.load %arg11[%c0_8, %c0_9, %c0_10] : memref<4x8x32xf32, #tpu.memory_space<vmem>>, vector<1x8x32xf32>
    %11 = vector.shape_cast %10 : vector<1x8x32xf32> to vector<8x32xf32>
    %12 = vector.extract_strided_slice %9 {offsets = [0, 0], sizes = [8, 32], strides = [1, 1]} : vector<8x128xf32> to vector<8x32xf32>
    %13 = arith.negf %12 : vector<8x32xf32>
    %14 = math.exp %13 : vector<8x32xf32>
    %cst_11 = arith.constant 1.000000e+00 : f32
    %15 = vector.broadcast %cst_11 : f32 to vector<8x32xf32>
    %16 = arith.addf %15, %14 : vector<8x32xf32>
    %17 = arith.divf %15, %16 : vector<8x32xf32>
    %18 = vector.extract_strided_slice %9 {offsets = [0, 32], sizes = [8, 32], strides = [1, 1]} : vector<8x128xf32> to vector<8x32xf32>
    %19 = arith.negf %18 : vector<8x32xf32>
    %20 = math.exp %19 : vector<8x32xf32>
    %cst_12 = arith.constant 1.000000e+00 : f32
    %21 = vector.broadcast %cst_12 : f32 to vector<8x32xf32>
    %22 = arith.addf %21, %20 : vector<8x32xf32>
    %23 = arith.divf %21, %22 : vector<8x32xf32>
    %24 = vector.extract_strided_slice %9 {offsets = [0, 64], sizes = [8, 32], strides = [1, 1]} : vector<8x128xf32> to vector<8x32xf32>
    %25 = math.tanh %24 : vector<8x32xf32>
    %26 = vector.extract_strided_slice %9 {offsets = [0, 96], sizes = [8, 32], strides = [1, 1]} : vector<8x128xf32> to vector<8x32xf32>
    %27 = arith.negf %26 : vector<8x32xf32>
    %28 = math.exp %27 : vector<8x32xf32>
    %cst_13 = arith.constant 1.000000e+00 : f32
    %29 = vector.broadcast %cst_13 : f32 to vector<8x32xf32>
    %30 = arith.addf %29, %28 : vector<8x32xf32>
    %31 = arith.divf %29, %30 : vector<8x32xf32>
    %32 = arith.mulf %23, %11 : vector<8x32xf32>
    %33 = arith.mulf %17, %25 : vector<8x32xf32>
    %34 = arith.addf %32, %33 : vector<8x32xf32>
    %35 = math.tanh %34 : vector<8x32xf32>
    %36 = arith.mulf %31, %35 : vector<8x32xf32>
    %c0_14 = arith.constant 0 : index
    %c0_15 = arith.constant 0 : index
    %c0_16 = arith.constant 0 : index
    %37 = vector.load %arg10[%c0_14, %c0_15, %c0_16] : memref<4x8x32xf32, #tpu.memory_space<vmem>>, vector<1x8x32xf32>
    %38 = vector.shape_cast %37 : vector<1x8x32xf32> to vector<8x32xf32>
    %39 = vector.shape_cast %36 : vector<8x32xf32> to vector<1x8x32xf32>
    tpu.vector_store %arg10[%c0_14, %c0_15, %c0_16], %39 {strides = array<i32>} : memref<4x8x32xf32, #tpu.memory_space<vmem>>, vector<1x8x32xf32>,
    %c0_17 = arith.constant 0 : index
    %c0_18 = arith.constant 0 : index
    %c0_19 = arith.constant 0 : index
    %40 = vector.load %arg11[%c0_17, %c0_18, %c0_19] : memref<4x8x32xf32, #tpu.memory_space<vmem>>, vector<1x8x32xf32>
    %41 = vector.shape_cast %40 : vector<1x8x32xf32> to vector<8x32xf32>
    %42 = vector.shape_cast %34 : vector<8x32xf32> to vector<1x8x32xf32>
    tpu.vector_store %arg11[%c0_17, %c0_18, %c0_19], %42 {strides = array<i32>} : memref<4x8x32xf32, #tpu.memory_space<vmem>>, vector<1x8x32xf32>,
    %c1 = arith.constant 1 : index
    %c0_20 = arith.constant 0 : index
    %c0_21 = arith.constant 0 : index
    %43 = vector.load %arg10[%c1, %c0_20, %c0_21] : memref<4x8x32xf32, #tpu.memory_space<vmem>>, vector<1x8x32xf32>
    %44 = vector.shape_cast %43 : vector<1x8x32xf32> to vector<8x32xf32>
    %45 = tpu.concatenate %36, %44 in 1 : vector<8x32xf32>, vector<8x32xf32> -> vector<8x64xf32>
    %c0_22 = arith.constant 0 : index
    %c0_23 = arith.constant 0 : index
    %c0_24 = arith.constant 0 : index
    %46 = vector.load %arg5[%c0_22, %c0_23, %c0_24] : memref<3x64x128xf32, #tpu.memory_space<vmem>>, vector<1x64x128xf32>
    %47 = vector.shape_cast %46 : vector<1x64x128xf32> to vector<64x128xf32>
    %cst_25 = arith.constant dense<0.000000e+00> : vector<8x128xf32>
    %48 = tpu.matmul %45, %47, %cst_25 {dimension_numbers = #tpu.dot_dimension_numbers<[1], [0], [0], [1], [0, 0, 1, 1], [], []>} : vector<8x64xf32>, vector<64x128xf32>, vector<8x128xf32> -> vector<8x128xf32>
    %c0_26 = arith.constant 0 : index
    %c0_27 = arith.constant 0 : index
    %c0_28 = arith.constant 0 : index
    %49 = vector.load %arg6[%c0_26, %c0_27, %c0_28] : memref<3x1x128xf32, #tpu.memory_space<vmem>>, vector<1x1x128xf32>
    %50 = vector.shape_cast %49 : vector<1x1x128xf32> to vector<1x128xf32>
    %51 = vector.broadcast %50 : vector<1x128xf32> to vector<8x128xf32>
    %52 = arith.addf %48, %51 : vector<8x128xf32>
    %c1_29 = arith.constant 1 : index
    %c0_30 = arith.constant 0 : index
    %c0_31 = arith.constant 0 : index
    %53 = vector.load %arg11[%c1_29, %c0_30, %c0_31] : memref<4x8x32xf32, #tpu.memory_space<vmem>>, vector<1x8x32xf32>
    %54 = vector.shape_cast %53 : vector<1x8x32xf32> to vector<8x32xf32>
    %55 = vector.extract_strided_slice %52 {offsets = [0, 0], sizes = [8, 32], strides = [1, 1]} : vector<8x128xf32> to vector<8x32xf32>
    %56 = arith.negf %55 : vector<8x32xf32>
    %57 = math.exp %56 : vector<8x32xf32>
    %cst_32 = arith.constant 1.000000e+00 : f32
    %58 = vector.broadcast %cst_32 : f32 to vector<8x32xf32>
    %59 = arith.addf %58, %57 : vector<8x32xf32>
    %60 = arith.divf %58, %59 : vector<8x32xf32>
    %61 = vector.extract_strided_slice %52 {offsets = [0, 32], sizes = [8, 32], strides = [1, 1]} : vector<8x128xf32> to vector<8x32xf32>
    %62 = arith.negf %61 : vector<8x32xf32>
    %63 = math.exp %62 : vector<8x32xf32>
    %cst_33 = arith.constant 1.000000e+00 : f32
    %64 = vector.broadcast %cst_33 : f32 to vector<8x32xf32>
    %65 = arith.addf %64, %63 : vector<8x32xf32>
    %66 = arith.divf %64, %65 : vector<8x32xf32>
    %67 = vector.extract_strided_slice %52 {offsets = [0, 64], sizes = [8, 32], strides = [1, 1]} : vector<8x128xf32> to vector<8x32xf32>
    %68 = math.tanh %67 : vector<8x32xf32>
    %69 = vector.extract_strided_slice %52 {offsets = [0, 96], sizes = [8, 32], strides = [1, 1]} : vector<8x128xf32> to vector<8x32xf32>
    %70 = arith.negf %69 : vector<8x32xf32>
    %71 = math.exp %70 : vector<8x32xf32>
    %cst_34 = arith.constant 1.000000e+00 : f32
    %72 = vector.broadcast %cst_34 : f32 to vector<8x32xf32>
    %73 = arith.addf %72, %71 : vector<8x32xf32>
    %74 = arith.divf %72, %73 : vector<8x32xf32>
    %75 = arith.mulf %66, %54 : vector<8x32xf32>
    %76 = arith.mulf %60, %68 : vector<8x32xf32>
    %77 = arith.addf %75, %76 : vector<8x32xf32>
    %78 = math.tanh %77 : vector<8x32xf32>
    %79 = arith.mulf %74, %78 : vector<8x32xf32>
    %c1_35 = arith.constant 1 : index
    %c0_36 = arith.constant 0 : index
    %c0_37 = arith.constant 0 : index
    %80 = vector.load %arg10[%c1_35, %c0_36, %c0_37] : memref<4x8x32xf32, #tpu.memory_space<vmem>>, vector<1x8x32xf32>
    %81 = vector.shape_cast %80 : vector<1x8x32xf32> to vector<8x32xf32>
    %82 = vector.shape_cast %79 : vector<8x32xf32> to vector<1x8x32xf32>
    tpu.vector_store %arg10[%c1_35, %c0_36, %c0_37], %82 {strides = array<i32>} : memref<4x8x32xf32, #tpu.memory_space<vmem>>, vector<1x8x32xf32>,
    %c1_38 = arith.constant 1 : index
    %c0_39 = arith.constant 0 : index
    %c0_40 = arith.constant 0 : index
    %83 = vector.load %arg11[%c1_38, %c0_39, %c0_40] : memref<4x8x32xf32, #tpu.memory_space<vmem>>, vector<1x8x32xf32>
    %84 = vector.shape_cast %83 : vector<1x8x32xf32> to vector<8x32xf32>
    %85 = vector.shape_cast %77 : vector<8x32xf32> to vector<1x8x32xf32>
    tpu.vector_store %arg11[%c1_38, %c0_39, %c0_40], %85 {strides = array<i32>} : memref<4x8x32xf32, #tpu.memory_space<vmem>>, vector<1x8x32xf32>,
    %c2 = arith.constant 2 : index
    %c0_41 = arith.constant 0 : index
    %c0_42 = arith.constant 0 : index
    %86 = vector.load %arg10[%c2, %c0_41, %c0_42] : memref<4x8x32xf32, #tpu.memory_space<vmem>>, vector<1x8x32xf32>
    %87 = vector.shape_cast %86 : vector<1x8x32xf32> to vector<8x32xf32>
    %88 = tpu.concatenate %79, %87 in 1 : vector<8x32xf32>, vector<8x32xf32> -> vector<8x64xf32>
    %c1_43 = arith.constant 1 : index
    %c0_44 = arith.constant 0 : index
    %c0_45 = arith.constant 0 : index
    %89 = vector.load %arg5[%c1_43, %c0_44, %c0_45] : memref<3x64x128xf32, #tpu.memory_space<vmem>>, vector<1x64x128xf32>
    %90 = vector.shape_cast %89 : vector<1x64x128xf32> to vector<64x128xf32>
    %cst_46 = arith.constant dense<0.000000e+00> : vector<8x128xf32>
    %91 = tpu.matmul %88, %90, %cst_46 {dimension_numbers = #tpu.dot_dimension_numbers<[1], [0], [0], [1], [0, 0, 1, 1], [], []>} : vector<8x64xf32>, vector<64x128xf32>, vector<8x128xf32> -> vector<8x128xf32>
    %c1_47 = arith.constant 1 : index
    %c0_48 = arith.constant 0 : index
    %c0_49 = arith.constant 0 : index
    %92 = vector.load %arg6[%c1_47, %c0_48, %c0_49] : memref<3x1x128xf32, #tpu.memory_space<vmem>>, vector<1x1x128xf32>
    %93 = vector.shape_cast %92 : vector<1x1x128xf32> to vector<1x128xf32>
    %94 = vector.broadcast %93 : vector<1x128xf32> to vector<8x128xf32>
    %95 = arith.addf %91, %94 : vector<8x128xf32>
    %c2_50 = arith.constant 2 : index
    %c0_51 = arith.constant 0 : index
    %c0_52 = arith.constant 0 : index
    %96 = vector.load %arg11[%c2_50, %c0_51, %c0_52] : memref<4x8x32xf32, #tpu.memory_space<vmem>>, vector<1x8x32xf32>
    %97 = vector.shape_cast %96 : vector<1x8x32xf32> to vector<8x32xf32>
    %98 = vector.extract_strided_slice %95 {offsets = [0, 0], sizes = [8, 32], strides = [1, 1]} : vector<8x128xf32> to vector<8x32xf32>
    %99 = arith.negf %98 : vector<8x32xf32>
    %100 = math.exp %99 : vector<8x32xf32>
    %cst_53 = arith.constant 1.000000e+00 : f32
    %101 = vector.broadcast %cst_53 : f32 to vector<8x32xf32>
    %102 = arith.addf %101, %100 : vector<8x32xf32>
    %103 = arith.divf %101, %102 : vector<8x32xf32>
    %104 = vector.extract_strided_slice %95 {offsets = [0, 32], sizes = [8, 32], strides = [1, 1]} : vector<8x128xf32> to vector<8x32xf32>
    %105 = arith.negf %104 : vector<8x32xf32>
    %106 = math.exp %105 : vector<8x32xf32>
    %cst_54 = arith.constant 1.000000e+00 : f32
    %107 = vector.broadcast %cst_54 : f32 to vector<8x32xf32>
    %108 = arith.addf %107, %106 : vector<8x32xf32>
    %109 = arith.divf %107, %108 : vector<8x32xf32>
    %110 = vector.extract_strided_slice %95 {offsets = [0, 64], sizes = [8, 32], strides = [1, 1]} : vector<8x128xf32> to vector<8x32xf32>
    %111 = math.tanh %110 : vector<8x32xf32>
    %112 = vector.extract_strided_slice %95 {offsets = [0, 96], sizes = [8, 32], strides = [1, 1]} : vector<8x128xf32> to vector<8x32xf32>
    %113 = arith.negf %112 : vector<8x32xf32>
    %114 = math.exp %113 : vector<8x32xf32>
    %cst_55 = arith.constant 1.000000e+00 : f32
    %115 = vector.broadcast %cst_55 : f32 to vector<8x32xf32>
    %116 = arith.addf %115, %114 : vector<8x32xf32>
    %117 = arith.divf %115, %116 : vector<8x32xf32>
    %118 = arith.mulf %109, %97 : vector<8x32xf32>
    %119 = arith.mulf %103, %111 : vector<8x32xf32>
    %120 = arith.addf %118, %119 : vector<8x32xf32>
    %121 = math.tanh %120 : vector<8x32xf32>
    %122 = arith.mulf %117, %121 : vector<8x32xf32>
    %c2_56 = arith.constant 2 : index
    %c0_57 = arith.constant 0 : index
    %c0_58 = arith.constant 0 : index
    %123 = vector.load %arg10[%c2_56, %c0_57, %c0_58] : memref<4x8x32xf32, #tpu.memory_space<vmem>>, vector<1x8x32xf32>
    %124 = vector.shape_cast %123 : vector<1x8x32xf32> to vector<8x32xf32>
    %125 = vector.shape_cast %122 : vector<8x32xf32> to vector<1x8x32xf32>
    tpu.vector_store %arg10[%c2_56, %c0_57, %c0_58], %125 {strides = array<i32>} : memref<4x8x32xf32, #tpu.memory_space<vmem>>, vector<1x8x32xf32>,
    %c2_59 = arith.constant 2 : index
    %c0_60 = arith.constant 0 : index
    %c0_61 = arith.constant 0 : index
    %126 = vector.load %arg11[%c2_59, %c0_60, %c0_61] : memref<4x8x32xf32, #tpu.memory_space<vmem>>, vector<1x8x32xf32>
    %127 = vector.shape_cast %126 : vector<1x8x32xf32> to vector<8x32xf32>
    %128 = vector.shape_cast %120 : vector<8x32xf32> to vector<1x8x32xf32>
    tpu.vector_store %arg11[%c2_59, %c0_60, %c0_61], %128 {strides = array<i32>} : memref<4x8x32xf32, #tpu.memory_space<vmem>>, vector<1x8x32xf32>,
    %c3 = arith.constant 3 : index
    %c0_62 = arith.constant 0 : index
    %c0_63 = arith.constant 0 : index
    %129 = vector.load %arg10[%c3, %c0_62, %c0_63] : memref<4x8x32xf32, #tpu.memory_space<vmem>>, vector<1x8x32xf32>
    %130 = vector.shape_cast %129 : vector<1x8x32xf32> to vector<8x32xf32>
    %131 = tpu.concatenate %122, %130 in 1 : vector<8x32xf32>, vector<8x32xf32> -> vector<8x64xf32>
    %c2_64 = arith.constant 2 : index
    %c0_65 = arith.constant 0 : index
    %c0_66 = arith.constant 0 : index
    %132 = vector.load %arg5[%c2_64, %c0_65, %c0_66] : memref<3x64x128xf32, #tpu.memory_space<vmem>>, vector<1x64x128xf32>
    %133 = vector.shape_cast %132 : vector<1x64x128xf32> to vector<64x128xf32>
    %cst_67 = arith.constant dense<0.000000e+00> : vector<8x128xf32>
    %134 = tpu.matmul %131, %133, %cst_67 {dimension_numbers = #tpu.dot_dimension_numbers<[1], [0], [0], [1], [0, 0, 1, 1], [], []>} : vector<8x64xf32>, vector<64x128xf32>, vector<8x128xf32> -> vector<8x128xf32>
    %c2_68 = arith.constant 2 : index
    %c0_69 = arith.constant 0 : index
    %c0_70 = arith.constant 0 : index
    %135 = vector.load %arg6[%c2_68, %c0_69, %c0_70] : memref<3x1x128xf32, #tpu.memory_space<vmem>>, vector<1x1x128xf32>
    %136 = vector.shape_cast %135 : vector<1x1x128xf32> to vector<1x128xf32>
    %137 = vector.broadcast %136 : vector<1x128xf32> to vector<8x128xf32>
    %138 = arith.addf %134, %137 : vector<8x128xf32>
    %c3_71 = arith.constant 3 : index
    %c0_72 = arith.constant 0 : index
    %c0_73 = arith.constant 0 : index
    %139 = vector.load %arg11[%c3_71, %c0_72, %c0_73] : memref<4x8x32xf32, #tpu.memory_space<vmem>>, vector<1x8x32xf32>
    %140 = vector.shape_cast %139 : vector<1x8x32xf32> to vector<8x32xf32>
    %141 = vector.extract_strided_slice %138 {offsets = [0, 0], sizes = [8, 32], strides = [1, 1]} : vector<8x128xf32> to vector<8x32xf32>
    %142 = arith.negf %141 : vector<8x32xf32>
    %143 = math.exp %142 : vector<8x32xf32>
    %cst_74 = arith.constant 1.000000e+00 : f32
    %144 = vector.broadcast %cst_74 : f32 to vector<8x32xf32>
    %145 = arith.addf %144, %143 : vector<8x32xf32>
    %146 = arith.divf %144, %145 : vector<8x32xf32>
    %147 = vector.extract_strided_slice %138 {offsets = [0, 32], sizes = [8, 32], strides = [1, 1]} : vector<8x128xf32> to vector<8x32xf32>
    %148 = arith.negf %147 : vector<8x32xf32>
    %149 = math.exp %148 : vector<8x32xf32>
    %cst_75 = arith.constant 1.000000e+00 : f32
    %150 = vector.broadcast %cst_75 : f32 to vector<8x32xf32>
    %151 = arith.addf %150, %149 : vector<8x32xf32>
    %152 = arith.divf %150, %151 : vector<8x32xf32>
    %153 = vector.extract_strided_slice %138 {offsets = [0, 64], sizes = [8, 32], strides = [1, 1]} : vector<8x128xf32> to vector<8x32xf32>
    %154 = math.tanh %153 : vector<8x32xf32>
    %155 = vector.extract_strided_slice %138 {offsets = [0, 96], sizes = [8, 32], strides = [1, 1]} : vector<8x128xf32> to vector<8x32xf32>
    %156 = arith.negf %155 : vector<8x32xf32>
    %157 = math.exp %156 : vector<8x32xf32>
    %cst_76 = arith.constant 1.000000e+00 : f32
    %158 = vector.broadcast %cst_76 : f32 to vector<8x32xf32>
    %159 = arith.addf %158, %157 : vector<8x32xf32>
    %160 = arith.divf %158, %159 : vector<8x32xf32>
    %161 = arith.mulf %152, %140 : vector<8x32xf32>
    %162 = arith.mulf %146, %154 : vector<8x32xf32>
    %163 = arith.addf %161, %162 : vector<8x32xf32>
    %164 = math.tanh %163 : vector<8x32xf32>
    %165 = arith.mulf %160, %164 : vector<8x32xf32>
    %c3_77 = arith.constant 3 : index
    %c0_78 = arith.constant 0 : index
    %c0_79 = arith.constant 0 : index
    %166 = vector.load %arg10[%c3_77, %c0_78, %c0_79] : memref<4x8x32xf32, #tpu.memory_space<vmem>>, vector<1x8x32xf32>
    %167 = vector.shape_cast %166 : vector<1x8x32xf32> to vector<8x32xf32>
    %168 = vector.shape_cast %165 : vector<8x32xf32> to vector<1x8x32xf32>
    tpu.vector_store %arg10[%c3_77, %c0_78, %c0_79], %168 {strides = array<i32>} : memref<4x8x32xf32, #tpu.memory_space<vmem>>, vector<1x8x32xf32>,
    %c3_80 = arith.constant 3 : index
    %c0_81 = arith.constant 0 : index
    %c0_82 = arith.constant 0 : index
    %169 = vector.load %arg11[%c3_80, %c0_81, %c0_82] : memref<4x8x32xf32, #tpu.memory_space<vmem>>, vector<1x8x32xf32>
    %170 = vector.shape_cast %169 : vector<1x8x32xf32> to vector<8x32xf32>
    %171 = vector.shape_cast %163 : vector<8x32xf32> to vector<1x8x32xf32>
    tpu.vector_store %arg11[%c3_80, %c0_81, %c0_82], %171 {strides = array<i32>} : memref<4x8x32xf32, #tpu.memory_space<vmem>>, vector<1x8x32xf32>,
    %c0_83 = arith.constant 0 : index
    %c0_84 = arith.constant 0 : index
    %c0_85 = arith.constant 0 : index
    %172 = vector.load %arg7[%c0_83, %c0_84, %c0_85] : memref<1x8x32xf32, #tpu.memory_space<vmem>>, vector<1x8x32xf32>
    %173 = vector.shape_cast %172 : vector<1x8x32xf32> to vector<8x32xf32>
    %174 = vector.shape_cast %165 : vector<8x32xf32> to vector<1x8x32xf32>
    tpu.vector_store %arg7[%c0_83, %c0_84, %c0_85], %174 {strides = array<i32>} : memref<1x8x32xf32, #tpu.memory_space<vmem>>, vector<1x8x32xf32>,
    %c7_i32 = arith.constant 7 : i32
    %175 = arith.cmpi eq, %arg0, %c7_i32 : i32
    %176 = arith.extui %175 : i1 to i32
    %c0_i32_86 = arith.constant 0 : i32
    %177 = arith.cmpi ne, %176, %c0_i32_86 : i32
    scf.if %177 {
      %c0_87 = arith.constant 0 : index
      %c0_88 = arith.constant 0 : index
      %c0_89 = arith.constant 0 : index
      %178 = vector.load %arg10[%c0_87, %c0_88, %c0_89] : memref<4x8x32xf32, #tpu.memory_space<vmem>>, vector<4x8x32xf32>
      %c0_90 = arith.constant 0 : index
      %c0_91 = arith.constant 0 : index
      %c0_92 = arith.constant 0 : index
      %179 = vector.load %arg8[%c0_90, %c0_91, %c0_92] : memref<4x8x32xf32, #tpu.memory_space<vmem>>, vector<4x8x32xf32>
      tpu.vector_store %arg8[%c0_90, %c0_91, %c0_92], %178 {strides = array<i32>} : memref<4x8x32xf32, #tpu.memory_space<vmem>>, vector<4x8x32xf32>,
      %c0_93 = arith.constant 0 : index
      %c0_94 = arith.constant 0 : index
      %c0_95 = arith.constant 0 : index
      %180 = vector.load %arg11[%c0_93, %c0_94, %c0_95] : memref<4x8x32xf32, #tpu.memory_space<vmem>>, vector<4x8x32xf32>
      %c0_96 = arith.constant 0 : index
      %c0_97 = arith.constant 0 : index
      %c0_98 = arith.constant 0 : index
      %181 = vector.load %arg9[%c0_96, %c0_97, %c0_98] : memref<4x8x32xf32, #tpu.memory_space<vmem>>, vector<4x8x32xf32>
      tpu.vector_store %arg9[%c0_96, %c0_97, %c0_98], %180 {strides = array<i32>} : memref<4x8x32xf32, #tpu.memory_space<vmem>>, vector<4x8x32xf32>,
    } else {
    }
    return
  }
  func.func @transform_0(%arg0: i32) -> (i32, i32, i32) {
    %c0_i32 = arith.constant 0 : i32
    %c0_i32_0 = arith.constant 0 : i32
    %c0_i32_1 = arith.constant 0 : i32
    return %arg0, %c0_i32, %c0_i32_0 : i32, i32, i32
  }
  func.func @transform_1(%arg0: i32) -> (i32, i32, i32) {
    %c0_i32 = arith.constant 0 : i32
    %c0_i32_0 = arith.constant 0 : i32
    %c0_i32_1 = arith.constant 0 : i32
    %c0_i32_2 = arith.constant 0 : i32
    return %c0_i32, %c0_i32_0, %c0_i32_1 : i32, i32, i32
  }
  func.func @transform_2(%arg0: i32) -> (i32, i32, i32) {
    %c0_i32 = arith.constant 0 : i32
    %c0_i32_0 = arith.constant 0 : i32
    %c0_i32_1 = arith.constant 0 : i32
    %c0_i32_2 = arith.constant 0 : i32
    return %c0_i32, %c0_i32_0, %c0_i32_1 : i32, i32, i32
  }
  func.func @transform_3(%arg0: i32) -> (i32, i32) {
    %c0_i32 = arith.constant 0 : i32
    %c0_i32_0 = arith.constant 0 : i32
    %c0_i32_1 = arith.constant 0 : i32
    return %c0_i32, %c0_i32_0 : i32, i32
  }
  func.func @transform_4(%arg0: i32) -> (i32, i32, i32) {
    %c0_i32 = arith.constant 0 : i32
    %c0_i32_0 = arith.constant 0 : i32
    %c0_i32_1 = arith.constant 0 : i32
    %c0_i32_2 = arith.constant 0 : i32
    return %c0_i32, %c0_i32_0, %c0_i32_1 : i32, i32, i32
  }
  func.func @transform_5(%arg0: i32) -> (i32, i32, i32) {
    %c0_i32 = arith.constant 0 : i32
    %c0_i32_0 = arith.constant 0 : i32
    %c0_i32_1 = arith.constant 0 : i32
    %c0_i32_2 = arith.constant 0 : i32
    return %c0_i32, %c0_i32_0, %c0_i32_1 : i32, i32, i32
  }
  func.func @transform_6(%arg0: i32) -> (i32, i32, i32) {
    %c0_i32 = arith.constant 0 : i32
    %c0_i32_0 = arith.constant 0 : i32
    %c0_i32_1 = arith.constant 0 : i32
    return %arg0, %c0_i32, %c0_i32_0 : i32, i32, i32
  }
  func.func @transform_7(%arg0: i32) -> (i32, i32, i32) {
    %c0_i32 = arith.constant 0 : i32
    %c0_i32_0 = arith.constant 0 : i32
    %c0_i32_1 = arith.constant 0 : i32
    %c0_i32_2 = arith.constant 0 : i32
    return %c0_i32, %c0_i32_0, %c0_i32_1 : i32, i32, i32
  }
  func.func @transform_8(%arg0: i32) -> (i32, i32, i32) {
    %c0_i32 = arith.constant 0 : i32
    %c0_i32_0 = arith.constant 0 : i32
    %c0_i32_1 = arith.constant 0 : i32
    %c0_i32_2 = arith.constant 0 : i32
    return %c0_i32, %c0_i32_0, %c0_i32_1 : i32, i32, i32
  }
}

</mosaic_0001>

<bundles_post_ra>
// kernel: decoder_forward.3
= control target key start
LH: loop header
LB: loop body
LE: loop exit
PB: predicated region body
PF: predicated region fallthrough
CT: control target
= control target key end

     0   :  { %vm33_vm0 = vcmask 261120   ;;  %s547_s1 = inlined_call_operand.vmem [shape: f32[32,32], index: 1, kind: input, shape index: {}]   ;;  %s548_s0 = inlined_call_operand.vmem [shape: f32[64,32], index: 0, kind: input, shape index: {}]   ;;  %s549_s2 = inlined_call_operand.vmem [shape: f32[1,32], index: 2, kind: input, shape index: {}]   ;;  %s550_s3 = inlined_call_operand.vmem [shape: f32[64,32], index: 3, kind: output, shape index: {}]  }
   0x1   :  { %v25_v0 = vld [vmem:[%s547_s1 + $0x18] sm:$0xff]  ;;  %v24_v1 = vld [vmem:[%s547_s1 + $0x10] sm:$0xff]  ;;  %v23_v2 = vld [vmem:[%s547_s1 + $0x8] sm:$0xff] }
   0x2   :  { %300 = vmatprep.subr.mxu0 %v25_v0  ;;  %320 = vmatprep.subr.mxu1 %v25_v0  ;;  %v22_v3 = vld [vmem:[%s547_s1] sm:$0xff]  ;;  %v15_v6 = vld [vmem:[%s548_s0 + $0x8] sm:$0xff]  ;;  %v16_v8 = vld [vmem:[%s548_s0 + $0x10] sm:$0xff] }
   0x3   :  { %301 = vmatpush3.msra.mxu0 %v25_v0  ;;  %324 = vmatpush3.msra.mxu1 %v25_v0  ;;  %v14_v4 = vld [vmem:[%s548_s0] sm:$0xff]  ;;  %v19_v7 = vld [vmem:[%s548_s0 + $0x28] sm:$0xff]  ;;  %v20_v9 = vld [vmem:[%s548_s0 + $0x30] sm:$0xff] }
   0x4   :  { %302 = vmatprep.subr.mxu0 %v24_v1  ;;  %321 = vmatprep.subr.mxu1 %v24_v1  ;;  %v18_v5 = vld [vmem:[%s548_s0 + $0x20] sm:$0xff]  ;;  %v17_v10 = vld [vmem:[%s548_s0 + $0x18] sm:$0xff] }
   0x5   :  { %303 = vmatpush3.msra.mxu0 %v24_v1  ;;  %325 = vmatpush3.msra.mxu1 %v24_v1  ;;  %v21_v11 = vld [vmem:[%s548_s0 + $0x38] sm:$0xff]  ;;  %v279_v12 = vld [vmem:[%s549_s2] ss:$0 sm:$0xff] }
   0x6   :  { %304 = vmatprep.subr.mxu0 %v23_v2  ;;  %322 = vmatprep.subr.mxu1 %v23_v2 }
   0x7   :  { %305 = vmatpush3.msra.mxu0 %v23_v2  ;;  %326 = vmatpush3.msra.mxu1 %v23_v2 }
   0x8   :  { %306 = vmatprep.subr.mxu0 %v22_v3  ;;  %323 = vmatprep.subr.mxu1 %v22_v3 }
   0x9   :  { %307 = vmatpush3.msra.mxu0 %v22_v3  ;;  %327 = vmatpush3.msra.mxu1 %v22_v3 }
   0xa   :  { %308 = vmatprep.mubr.msk.f32.mxu0 %vm33_vm0, %v14_v4  ;;  %314 = vmatprep.mubr.msk.f32.mxu1 %vm33_vm0, %v18_v5 }
   0xb   :  { %309 = vmatmul.mubr.msk.f32.vlgmr.msra.gmra.mxu0 %vm33_vm0, %v15_v6  ;;  %315 = vmatmul.mubr.msk.f32.vlgmr.msra.gmra.mxu1 %vm33_vm0, %v19_v7 }
   0xc   :  { %311 = vmatprep.mubr.msk.f32.mxu0 %vm33_vm0, %v16_v8  ;;  %317 = vmatprep.mubr.msk.f32.mxu1 %vm33_vm0, %v20_v9 }
   0xf   :  { %312 = vmatmul.mubr.msk.f32.gmra.mxu0 %vm33_vm0, %v17_v10  ;;  %318 = vmatmul.mubr.msk.f32.gmra.mxu1 %vm33_vm0, %v21_v11 }
  0xcb   :  { %v310_v13 = vpop.f32.mrf.mxu0  ;;  %v316_v14 = vpop.f32.mrf.mxu1 }
  0xcc   :  { %v427_v15 = vadd.f32 %v310_v13, %v279_v12  ;;  %v429_v16 = vadd.f32 %v316_v14, %v279_v12 }
  0xcd   :  { %v124_v17 = vpop.f32.mrf.mxu0  ;;  %v144_v18 = vpop.f32.mrf.mxu1 }
  0xce   :  { %v431_v19 = vadd.f32 %v279_v12, %v124_v17  ;;  %v178_v20 = vsel %vm33_vm0, %v429_v16, -inf  ;;  %v166_v21 = vsel %vm33_vm0, %v427_v15, -inf  ;;  %v439_v27 = vadd.f32 %v279_v12, %v144_v18 }
  0xcf   :  { %179 = vmax.xlane.f32.xlu1 %v178_v20  ;;  %167 = vmax.xlane.f32.xlu0 %v166_v21  ;;  %v313_v22 = vpop.f32.mrf.mxu0  ;;  %v319_v23 = vpop.f32.mrf.mxu1 }
  0xd0   :  { %v437_v24 = vadd.f32 %v313_v22, %v279_v12  ;;  %v163_v30 = vsel %vm33_vm0, %v431_v19, -inf  ;;  %v447_v31 = vadd.f32 %v319_v23, %v279_v12  ;;  %v175_v34 = vsel %vm33_vm0, %v439_v27, -inf }
  0xd1   :  { %v134_v25 = vpop.f32.mrf.mxu0  ;;  %v154_v26 = vpop.f32.mrf.mxu1 }
  0xd2   :  { %v172_v28 = vsel %vm33_vm0, %v437_v24, -inf  ;;  %v443_v29 = vadd.f32 %v279_v12, %v134_v25  ;;  %v449_v32 = vadd.f32 %v279_v12, %v154_v26  ;;  %v184_v35 = vsel %vm33_vm0, %v447_v31, -inf }
  0xd3   :  { %173 = vmax.xlane.f32.xlu1 %v172_v28  ;;  %164 = vmax.xlane.f32.xlu0 %v163_v30 }
  0xd4   :  { %v169_v33 = vsel %vm33_vm0, %v443_v29, -inf  ;;  %v181_v36 = vsel %vm33_vm0, %v449_v32, -inf }
  0xd7   :  { %170 = vmax.xlane.f32.xlu1 %v169_v33  ;;  %176 = vmax.xlane.f32.xlu0 %v175_v34 }
  0xdb   :  { %185 = vmax.xlane.f32.xlu1 %v184_v35  ;;  %182 = vmax.xlane.f32.xlu0 %v181_v36 }
 0x158   :  { %v459_v37 = vpop.xlane.xlu1 %179  ;;  %v461_v38 = vpop.xlane.xlu0 %167 }
 0x159   :  { %v192_v39 = vsub.f32 %v429_v16, %v459_v37  ;;  %v188_v40 = vsub.f32 %v427_v15, %v461_v38 }
 0x15b   :  { %v197_v41 = vmul.f32 1.442695, %v188_v40  ;;  %v205_v42 = vmul.f32 1.442695, %v192_v39 }
 0x15c   :  { %v467_v43 = vpop.xlane.xlu1 %173  ;;  %v469_v44 = vpop.xlane.xlu0 %164 }
 0x15d   :  { %v190_v45 = vsub.f32 %v437_v24, %v467_v43  ;;  %v187_v46 = vsub.f32 %v431_v19, %v469_v44  ;;  %328 = vpow2.f32 %v197_v41 }
 0x15e   :  { %330 = vpow2.f32 %v205_v42 }
 0x15f   :  { %v195_v47 = vmul.f32 1.442695, %v187_v46  ;;  %v201_v48 = vmul.f32 1.442695, %v190_v45 }
 0x160   :  { %v475_v49 = vpop.xlane.xlu1 %170  ;;  %v477_v50 = vpop.xlane.xlu0 %176 }
 0x161   :  { %v189_v51 = vsub.f32 %v443_v29, %v475_v49  ;;  %v191_v52 = vsub.f32 %v439_v27, %v477_v50  ;;  %332 = vpow2.f32 %v195_v47 }
 0x162   :  { %334 = vpow2.f32 %v201_v48 }
 0x163   :  { %v203_v53 = vmul.f32 1.442695, %v191_v52  ;;  %v199_v54 = vmul.f32 1.442695, %v189_v51 }
 0x164   :  { %v483_v55 = vpop.xlane.xlu1 %185  ;;  %v485_v56 = vpop.xlane.xlu0 %182 }
 0x165   :  { %v194_v57 = vsub.f32 %v447_v31, %v483_v55  ;;  %v193_v58 = vsub.f32 %v449_v32, %v485_v56  ;;  %336 = vpow2.f32 %v203_v53 }
 0x166   :  { %338 = vpow2.f32 %v199_v54 }
 0x167   :  { %v209_v59 = vmul.f32 1.442695, %v194_v57  ;;  %v207_v60 = vmul.f32 1.442695, %v193_v58 }
 0x169   :  { %340 = vpow2.f32 %v209_v59 }
 0x16a   :  { %v329_v61 = vpop.eup %328  ;;  %342 = vpow2.f32 %v207_v60 }
 0x16b   :  { %v214_v62 = vsel %vm33_vm0, %v329_v61, 0.0  ;;  %v331_v63 = vpop.eup %330 }
 0x16c   :  { %215 = vadd.xlane.f32.xlu1 %v214_v62  ;;  %v226_v1 = vsel %vm33_vm0, %v331_v63, 0.0 }
 0x16e   :  { %v333_v0 = vpop.eup %332 }
 0x16f   :  { %v211_v2 = vsel %vm33_vm0, %v333_v0, 0.0  ;;  %v335_v3 = vpop.eup %334 }
 0x170   :  { %227 = vadd.xlane.f32.xlu1 %v226_v1  ;;  %212 = vadd.xlane.f32.xlu0 %v211_v2  ;;  %v220_v5 = vsel %vm33_vm0, %v335_v3, 0.0 }
 0x172   :  { %v337_v4 = vpop.eup %336 }
 0x173   :  { %v223_v6 = vsel %vm33_vm0, %v337_v4, 0.0  ;;  %v339_v7 = vpop.eup %338 }
 0x174   :  { %221 = vadd.xlane.f32.xlu1 %v220_v5  ;;  %224 = vadd.xlane.f32.xlu0 %v223_v6  ;;  %v217_v10 = vsel %vm33_vm0, %v339_v7, 0.0 }
 0x176   :  { %v341_v8 = vpop.eup %340 }
 0x177   :  { %v232_v9 = vsel %vm33_vm0, %v341_v8, 0.0  ;;  %v343_v11 = vpop.eup %342 }
 0x178   :  { %233 = vadd.xlane.f32.xlu1 %v232_v9  ;;  %218 = vadd.xlane.f32.xlu0 %v217_v10  ;;  %v229_v12 = vsel %vm33_vm0, %v343_v11, 0.0 }
 0x17c   :  { %230 = vadd.xlane.f32.xlu0 %v229_v12 }
 0x1f5   :  { %v216_v13 = vpop.xlane.xlu1 %215 }
 0x1f6   :  { %344 = vlog2.f32 %v216_v13 }
 0x1f9   :  { %v228_v14 = vpop.xlane.xlu1 %227  ;;  %v213_v17 = vpop.xlane.xlu0 %212 }
 0x1fa   :  { %346 = vlog2.f32 %v228_v14 }
 0x1fb   :  { %348 = vlog2.f32 %v213_v17 }
 0x1fd   :  { %v222_v18 = vpop.xlane.xlu1 %221  ;;  %v225_v20 = vpop.xlane.xlu0 %224 }
 0x1fe   :  { %350 = vlog2.f32 %v222_v18 }
 0x1ff   :  { %352 = vlog2.f32 %v225_v20 }
 0x201   :  { %v234_v21 = vpop.xlane.xlu1 %233  ;;  %v219_v22 = vpop.xlane.xlu0 %218 }
 0x202   :  { %354 = vlog2.f32 %v234_v21 }
 0x203   :  { %v345_v23 = vpop.eup %344  ;;  %356 = vlog2.f32 %v219_v22 }
 0x204   :  { %v238_v25 = vmul.f32 0.6931472, %v345_v23 }
 0x205   :  { %v231_v26 = vpop.xlane.xlu0 %230 }
 0x206   :  { %v252_v28 = vadd.f32 %v238_v25, %v461_v38  ;;  %358 = vlog2.f32 %v231_v26 }
 0x207   :  { %v347_v30 = vpop.eup %346 }
 0x208   :  { %v349_v33 = vpop.eup %348  ;;  %v260_v34 = vsub.f32 %v427_v15, %v252_v28  ;;  %v246_v35 = vmul.f32 0.6931472, %v347_v30 }
 0x209   :  { %v236_v36 = vmul.f32 0.6931472, %v349_v33 }
 0x20a   :  { %268 = vst.msk [vmem:[%s550_s3 + $0x8] sm:$0xff] %vm33_vm0, %v260_v34  ;;  %v256_v39 = vadd.f32 %v246_v35, %v459_v37 }
 0x20b   :  { %v351_v40 = vpop.eup %350  ;;  %v251_v41 = vadd.f32 %v236_v36, %v469_v44 }
 0x20c   :  { %v353_v42 = vpop.eup %352  ;;  %v264_v38 = vsub.f32 %v429_v16, %v256_v39  ;;  %v242_v45 = vmul.f32 0.6931472, %v351_v40 }
 0x20d   :  { %v259_v46 = vsub.f32 %v431_v19, %v251_v41  ;;  %v244_v47 = vmul.f32 0.6931472, %v353_v42 }
 0x20e   :  { %272 = vst.msk [vmem:[%s550_s3 + $0x28] sm:$0xff] %vm33_vm0, %v264_v38  ;;  %v254_v15 = vadd.f32 %v242_v45, %v467_v43 }
 0x20f   :  { %v355_v48 = vpop.eup %354  ;;  %267 = vst.msk [vmem:[%s550_s3] sm:$0xff] %vm33_vm0, %v259_v46  ;;  %v255_v37 = vadd.f32 %v244_v47, %v477_v50 }
 0x210   :  { %v357_v16 = vpop.eup %356  ;;  %v262_v44 = vsub.f32 %v437_v24, %v254_v15  ;;  %v250_v19 = vmul.f32 0.6931472, %v355_v48 }
 0x211   :  { %v263_v51 = vsub.f32 %v439_v27, %v255_v37  ;;  %v240_v52 = vmul.f32 0.6931472, %v357_v16 }
 0x212   :  { %270 = vst.msk [vmem:[%s550_s3 + $0x18] sm:$0xff] %vm33_vm0, %v262_v44  ;;  %v258_v43 = vadd.f32 %v250_v19, %v483_v55 }
 0x213   :  { %v359_v53 = vpop.eup %358  ;;  %271 = vst.msk [vmem:[%s550_s3 + $0x20] sm:$0xff] %vm33_vm0, %v263_v51  ;;  %v253_v50 = vadd.f32 %v240_v52, %v475_v49 }
 0x214   :  { %v266_v24 = vsub.f32 %v447_v31, %v258_v43  ;;  %v248_v54 = vmul.f32 0.6931472, %v359_v53 }
 0x215   :  { %v261_v27 = vsub.f32 %v443_v29, %v253_v50 }
 0x216   :  { %274 = vst.msk [vmem:[%s550_s3 + $0x38] sm:$0xff] %vm33_vm0, %v266_v24  ;;  %v257_v55 = vadd.f32 %v248_v54, %v485_v56 }
 0x217   :  { %269 = vst.msk [vmem:[%s550_s3 + $0x10] sm:$0xff] %vm33_vm0, %v261_v27 }
 0x218   :  { %v265_v57 = vsub.f32 %v449_v32, %v257_v55 }
 0x21a   :  { %273 = vst.msk [vmem:[%s550_s3 + $0x30] sm:$0xff] %vm33_vm0, %v265_v57 }

// kernel: decoder_forward.2
= control target key start
LH: loop header
LB: loop body
LE: loop exit
PB: predicated region body
PF: predicated region fallthrough
CT: control target
= control target key end

     0   :  { %s1176_s27 = smov 0   ;;  %s1437_s0 = inlined_call_operand.vmem [shape: f32[8,8,128], index: 0, kind: input, shape index: {}]   ;;  %s1438_s1 = inlined_call_operand.vmem [shape: f32[4,8,32], index: 1, kind: input, shape index: {}]   ;;  %s1439_s2 = inlined_call_operand.vmem [shape: f32[4,8,32], index: 2, kind: input, shape index: {}]   ;;  %s1440_s3 = inlined_call_operand.vmem [shape: f32[32,128], index: 3, kind: input, shape index: {}]   ;;  %s1441_s4 = inlined_call_operand.vmem [shape: f32[3,64,128], index: 4, kind: input, shape index: {}]   ;;  %s1442_s5 = inlined_call_operand.vmem [shape: f32[3,1,128], index: 5, kind: input, shape index: {}]   ;;  %s1443_s6 = inlined_call_operand.vmem [shape: f32[8,8,32], index: 6, kind: output, shape index: {0}]   ;;  %s1444_s7 = inlined_call_operand.vmem [shape: f32[4,8,32], index: 7, kind: output, shape index: {1}]   ;;  %s1445_s8 = inlined_call_operand.vmem [shape: f32[4,8,32], index: 8, kind: output, shape index: {2}]  }
   0x1 LB: > { %s1182_s28 = sadd.s32 4294967295, %s1124_s27   ;;  %p937_p0 = scmp.ge.s32.totalorder %s1124_s27, 1  ;;  %s1124_s27 = sphi %s1176_s27, %s19_s27  }
   0x2   : > { %p256_p1 = scmp.lt.s32.totalorder %s1124_s27, 9 }
   0x4   : > { %p257_p2 = pnand %p937_p0, %p256_p1 }
   0x5   : > { %p288_p3 = scmp.lt.s32.totalorder (!%p257_p2), %s1182_s28, 7  ;;  %p940_p4 = scmp.ne.s32.totalorder (!%p257_p2), %s1182_s28, 0 }
   0x6   : > { %260 = sbr.rel (%p257_p2) target bundleno = 2799 (0xaef), region = 44 }
   0xb   : > { %s289_s29 = scalar_select %p288_p3, %s1182_s28, 7 }
   0xc   : > { %299 = sbr.rel (%p940_p4) target bundleno = 22 (0x16), region = 48 }
   0xd   : > { %s938_s30 = sshll.u32 %s289_s29, 3 }
   0xe   : > { %s1191_s11 = scalar_lea.vmem %s1437_s0, %s938_s30  ;;  %s1196_s14 = scalar_lea.vmem %s1443_s6, %s938_s30 }
  0x11   : > { %v300_v0 = vld [vmem:[%s1438_s1] sm:$0xff]  ;;  %vm304_vm0 = vcmask 261120   ;;  %v301_v1 = vld [vmem:[%s1438_s1 + $0x8] sm:$0xff]  ;;  %v302_v2 = vld [vmem:[%s1438_s1 + $0x10] sm:$0xff] }
  0x12   : > { %305 = vst.msk [vmem:[#allocation2] sm:$0xff] %vm304_vm0, %v300_v0  ;;  %306 = vst.msk [vmem:[#allocation2 + $0x8] sm:$0xff] %vm304_vm0, %v301_v1  ;;  %v303_v3 = vld [vmem:[%s1438_s1 + $0x18] sm:$0xff]  ;;  %v309_v4 = vld [vmem:[%s1439_s2] sm:$0xff] }
  0x13   : > { %307 = vst.msk [vmem:[#allocation2 + $0x10] sm:$0xff] %vm304_vm0, %v302_v2  ;;  %v310_v5 = vld [vmem:[%s1439_s2 + $0x8] sm:$0xff]  ;;  %308 = vst.msk [vmem:[#allocation2 + $0x18] sm:$0xff] %vm304_vm0, %v303_v3  ;;  %v311_v6 = vld [vmem:[%s1439_s2 + $0x10] sm:$0xff] }
  0x14   : > { %313 = vst.msk [vmem:[#allocation3] sm:$0xff] %vm304_vm0, %v309_v4  ;;  %314 = vst.msk [vmem:[#allocation3 + $0x8] sm:$0xff] %vm304_vm0, %v310_v5  ;;  %v312_v7 = vld [vmem:[%s1439_s2 + $0x18] sm:$0xff] }
  0x15   : > { %315 = vst.msk [vmem:[#allocation3 + $0x10] sm:$0xff] %vm304_vm0, %v311_v6  ;;  %316 = vst.msk [vmem:[#allocation3 + $0x18] sm:$0xff] %vm304_vm0, %v312_v7 }
  0x16 PF: > { %v322_v8 = vld [vmem:[%s1440_s3 + $0x18] sm:$0xff]  ;;  %v1126_v9 = vmov 0.0   ;;  %v321_v10 = vld [vmem:[%s1440_s3 + $0x10] sm:$0xff]  ;;  %vm1127_vm1 = vmmov 0   ;;  %v320_v11 = vld [vmem:[%s1440_s3 + $0x8] sm:$0xff]  ;;  %vm323_vm2 = vcmask 261120  }
  0x17   : > { %1005 = vmatprep.subr.mxu0 %v1126_v9  ;;  %1013 = vmatprep.mubr.msk.f32.mxu0 %vm1127_vm1, %v1126_v9  ;;  %v319_v12 = vld [vmem:[%s1440_s3] sm:$0xff]  ;;  %s1128_s21 = smov 64   ;;  %s1129_s22 = smov 32   ;;  %v451_v30 = vld [vmem:[%s1441_s4 + $0x38] sm:$0xff]  ;;  %v450_v31 = vld [vmem:[%s1441_s4 + $0x30] sm:$0xff]  ;;  %vm459_vm3 = vcmask 523264  }
  0x18   : > { %1006 = vmatpush3.msra.mxu0 %v322_v8  ;;  %1016 = vmatprep.subr.mxu1 %v1126_v9  ;;  %v317_v14 = vld [vmem:[%s1191_s11] sm:$0xff]  ;;  %v449_v32 = vld [vmem:[%s1441_s4 + $0x28] sm:$0xff]  ;;  %v447_v34 = vld [vmem:[%s1441_s4 + $0x18] sm:$0xff]  ;;  %s1130_s25 = smov 96   ;;  %p970_p5 = scmp.ne.s32.totalorder %s1182_s28, 7 }
  0x19   : > { %1007 = vmatprep.subr.mxu0 %v1126_v9  ;;  %1032 = vmatprep.mubr.msk.f32.mxu1 %vm1127_vm1, %v1126_v9  ;;  %v318_v13 = vld [vmem:[#allocation2] sm:$0xff]  ;;  %v446_v35 = vld [vmem:[%s1441_s4 + $0x10] sm:$0xff]  ;;  %v445_v37 = vld [vmem:[%s1441_s4 + $0x8] sm:$0xff] }
  0x1a   : > { %1008 = vmatpush3.msra.mxu0 %v321_v10  ;;  %1017 = vmatpush3.msra.mxu1 %v451_v30  ;;  %v448_v33 = vld [vmem:[%s1441_s4 + $0x20] sm:$0xff]  ;;  %v438_v38 = vld [vmem:[#allocation2 + $0x8] sm:$0xff]  ;;  %v953_v61 = vld [vmem:[%s1441_s4 + $0x78] sm:$0xff] }
  0x1b   : > { %1009 = vmatprep.subr.mxu0 %v1126_v9  ;;  %v398_v19 = vld [vmem:[#allocation3] sm:$0xff]  ;;  %1018 = vmatprep.subr.mxu1 %v1126_v9  ;;  %v534_v40 = vld [vmem:[#allocation3 + $0x8] sm:$0xff]  ;;  %v952_v62 = vld [vmem:[%s1441_s4 + $0x70] sm:$0xff] }
  0x1c   : > { %1010 = vmatpush3.msra.mxu0 %v320_v11  ;;  %1019 = vmatpush3.msra.mxu1 %v450_v31  ;;  %v444_v39 = vld [vmem:[%s1441_s4] sm:$0xff]  ;;  %v951_v63 = vld [vmem:[%s1441_s4 + $0x68] sm:$0xff]  ;;  %v949_v1 = vld [vmem:[%s1441_s4 + $0x58] sm:$0xff] }
  0x1d   : > { %1011 = vmatprep.subr.mxu0 %v1126_v9  ;;  %1020 = vmatprep.subr.mxu1 %v1126_v9  ;;  %v943_v46 = vld [vmem:[%s1442_s5] ss:$0 sm:$0xff]  ;;  %v948_v2 = vld [vmem:[%s1441_s4 + $0x50] sm:$0xff]  ;;  %v947_v4 = vld [vmem:[%s1441_s4 + $0x48] sm:$0xff] }
  0x1e   : > { %1012 = vmatpush3.msra.mxu0 %v319_v12  ;;  %1021 = vmatpush3.msra.mxu1 %v449_v32  ;;  %v950_v0 = vld [vmem:[%s1441_s4 + $0x60] sm:$0xff]  ;;  %v574_v5 = vld [vmem:[#allocation2 + $0x10] sm:$0xff]  ;;  %v965_v30 = vld [vmem:[%s1441_s4 + $0xb8] sm:$0xff] }
  0x1f   : > { %1014 = vmatmul.mubr.msk.f32.vlgmr.msra.gmra.mxu0 %vm323_vm2, %v318_v13  ;;  %1035 = vmatprep.subr.mxu0 %v1126_v9  ;;  %v946_v6 = vld [vmem:[%s1441_s4 + $0x40] sm:$0xff]  ;;  %v671_v7 = vld [vmem:[#allocation3 + $0x10] sm:$0xff]  ;;  %v963_v32 = vld [vmem:[%s1441_s4 + $0xa8] sm:$0xff] }
  0x20   : > { %1051 = vmatprep.mubr.msk.f32.mxu0 %vm1127_vm1, %v1126_v9  ;;  %1022 = vmatprep.subr.mxu1 %v1126_v9  ;;  %v964_v31 = vld [vmem:[%s1441_s4 + $0xb0] sm:$0xff] }
  0x21   : > { %1023 = vmatpush3.msra.mxu1 %v448_v33  ;;  %1036 = vmatpush3.msra.mxu0 %v953_v61  ;;  %v962_v33 = vld [vmem:[%s1441_s4 + $0xa0] sm:$0xff] }
  0x22   : > { %1024 = vmatprep.subr.mxu1 %v1126_v9  ;;  %1037 = vmatprep.subr.mxu0 %v1126_v9 }
  0x23   : > { %1025 = vmatpush3.msra.mxu1 %v447_v34  ;;  %1038 = vmatpush3.msra.mxu0 %v952_v62  ;;  %v961_v34 = vld [vmem:[%s1441_s4 + $0x98] sm:$0xff] }
  0x24   : > { %1026 = vmatprep.subr.mxu1 %v1126_v9  ;;  %1039 = vmatprep.subr.mxu0 %v1126_v9 }
  0x25   : > { %1027 = vmatpush3.msra.mxu1 %v446_v35  ;;  %1040 = vmatpush3.msra.mxu0 %v951_v63  ;;  %v960_v35 = vld [vmem:[%s1441_s4 + $0x90] sm:$0xff] }
  0x26   : > { %1028 = vmatprep.subr.mxu1 %v1126_v9  ;;  %1041 = vmatprep.subr.mxu0 %v1126_v9 }
  0x27   : > { %1029 = vmatpush3.msra.mxu1 %v445_v37  ;;  %1042 = vmatpush3.msra.mxu0 %v950_v0  ;;  %v959_v37 = vld [vmem:[%s1441_s4 + $0x88] sm:$0xff] }
  0x28   : > { %1030 = vmatprep.subr.mxu1 %v1126_v9  ;;  %1043 = vmatprep.subr.mxu0 %v1126_v9 }
  0x29   : > { %1031 = vmatpush3.msra.mxu1 %v444_v39  ;;  %1044 = vmatpush3.msra.mxu0 %v949_v1  ;;  %v958_v39 = vld [vmem:[%s1441_s4 + $0x80] sm:$0xff] }
  0x2a   : > { %1054 = vmatprep.subr.mxu1 %v1126_v9  ;;  %1045 = vmatprep.subr.mxu0 %v1126_v9 }
  0x2b   : > { %1046 = vmatpush3.msra.mxu0 %v948_v2 }
  0x2c   : > { %1047 = vmatprep.subr.mxu0 %v1126_v9 }
  0x2d   : > { %1048 = vmatpush3.msra.mxu0 %v947_v4 }
  0x2e   : > { %1049 = vmatprep.subr.mxu0 %v1126_v9 }
  0x2f   : > { %1050 = vmatpush3.msra.mxu0 %v946_v6 }
  0xdf   : > { %v393_v15 = vpop.f32.mrf.mxu0 }
  0xe0   : > { %v397_v16 = vadd.f32 %v393_v15, %v317_v14  ;;  %v955_v14 = vld [vmem:[%s1442_s5 + $0x1] ss:$0 sm:$0xff] }
  0xe1   : > { %v1015_v17 = vpop.f32.mrf.mxu0 }
  0xe2   : > { %1086 = vtanh.f32 %v397_v16  ;;  %v942_v20 = vmul.f32 -1.442695, %v397_v16 }
  0xe4   : > { %1088 = vpow2.f32 %v942_v20 }
  0xef   : > { %v1087_v18 = vpop.eup %1086 }
  0xf0   : > { %412 = vrot.lane.b32.xlu0 %v1087_v18, %s1128_s21 }
  0xf1   : > { %v1089_v21 = vpop.eup %1088 }
  0xf2   : > { %v402_v22 = vadd.f32 1.0, %v1089_v21 }
  0xf4   : > { %407 = vrot.lane.b32.xlu0 %v398_v19, %s1129_s22  ;;  %1090 = vrcp.f32 %v402_v22 }
 0x101   : > { %v1091_v23 = vpop.eup %1090 }
 0x162   : > { %v413_v24 = vpop.permute.xlu0 %412 }
 0x163   : > { %v415_v25 = vmul.f32 %v1091_v23, %v413_v24 }
 0x165   : > { %417 = vrot.lane.b32.xlu1 %v415_v25, %s1129_s22 }
 0x166   : > { %v408_v26 = vpop.permute.xlu0 %407 }
 0x167   : > { %v410_v27 = vmul.f32 %v1091_v23, %v408_v26 }
 0x1d7   : > { %v418_v28 = vpop.permute.xlu1 %417 }
 0x1d8   : > { %v1252_v29 = vadd.f32 %v418_v28, %v410_v27 }
 0x1da   : > { %1092 = vtanh.f32 %v1252_v29 }
 0x1e7   : > { %v1093_v36 = vpop.eup %1092 }
 0x1e8   : > { %423 = vrot.lane.b32.xlu1 %v1093_v36, %s1128_s21 }
 0x1ec   : > { %440 = vrot.lane.b32.xlu1 %v438_v38, %s1129_s22  ;;  %v711_v38 = vld [vmem:[#allocation2 + $0x18] sm:$0xff] }
 0x1f0   : > { %543 = vrot.lane.b32.xlu1 %v534_v40, %s1129_s22  ;;  %v808_v40 = vld [vmem:[#allocation3 + $0x18] sm:$0xff] }
 0x25a   : > { %v424_v41 = vpop.permute.xlu1 %423 }
 0x25b   : > { %v426_v42 = vmul.f32 %v1091_v23, %v424_v41 }
 0x25d   : > { %428 = vrot.lane.b32.xlu0 %v426_v42, %s1129_s22 }
 0x25e   : > { %v441_v43 = vpop.permute.xlu1 %440 }
 0x262   : > { %v544_v57 = vpop.permute.xlu1 %543 }
 0x2cf   : > { %v429_v44 = vpop.permute.xlu0 %428 }
 0x2d0   : > { %431 = vst.msk [vmem:[#allocation2] sm:$0xff] %vm323_vm2, %v429_v44  ;;  %v443_v45 = vsel %vm323_vm2, %v429_v44, %v441_v43 }
 0x2d1   : > { %1033 = vmatmul.mubr.msk.f32.vlgmr.msra.gmra.mxu1 %vm459_vm3, %v443_v45  ;;  %v967_v45 = vld [vmem:[%s1442_s5 + $0x2] ss:$0 sm:$0xff] }
 0x2d2   : > { %1070 = vmatprep.mubr.msk.f32.mxu1 %vm1127_vm1, %v1126_v9  ;;  %1055 = vmatpush3.msra.mxu1 %v965_v30 }
 0x2d3   : > { %1056 = vmatprep.subr.mxu1 %v1126_v9 }
 0x2d4   : > { %1057 = vmatpush3.msra.mxu1 %v964_v31 }
 0x2d5   : > { %1058 = vmatprep.subr.mxu1 %v1126_v9 }
 0x2d6   : > { %1059 = vmatpush3.msra.mxu1 %v963_v32 }
 0x2d7   : > { %1060 = vmatprep.subr.mxu1 %v1126_v9 }
 0x2d8   : > { %1061 = vmatpush3.msra.mxu1 %v962_v33 }
 0x2d9   : > { %1062 = vmatprep.subr.mxu1 %v1126_v9 }
 0x2da   : > { %1063 = vmatpush3.msra.mxu1 %v961_v34 }
 0x2db   : > { %1064 = vmatprep.subr.mxu1 %v1126_v9 }
 0x2dc   : > { %1065 = vmatpush3.msra.mxu1 %v960_v35 }
 0x2dd   : > { %1066 = vmatprep.subr.mxu1 %v1126_v9 }
 0x2de   : > { %1067 = vmatpush3.msra.mxu1 %v959_v37 }
 0x2df   : > { %1068 = vmatprep.subr.mxu1 %v1126_v9 }
 0x2e0   : > { %1069 = vmatpush3.msra.mxu1 %v958_v39 }
 0x391   : > { %v529_v47 = vpop.f32.mrf.mxu1 }
 0x392   : > { %v530_v48 = vadd.f32 %v943_v46, %v529_v47 }
 0x393   : > { %v1034_v49 = vpop.f32.mrf.mxu1 }
 0x394   : > { %1094 = vtanh.f32 %v530_v48  ;;  %v945_v51 = vmul.f32 -1.442695, %v530_v48 }
 0x396   : > { %1096 = vpow2.f32 %v945_v51 }
 0x3a1   : > { %v1095_v50 = vpop.eup %1094 }
 0x3a2   : > { %548 = vrot.lane.b32.xlu0 %v1095_v50, %s1128_s21 }
 0x3a3   : > { %v1097_v52 = vpop.eup %1096 }
 0x3a4   : > { %v538_v53 = vadd.f32 1.0, %v1097_v52 }
 0x3a6   : > { %1098 = vrcp.f32 %v538_v53 }
 0x3b3   : > { %v1099_v54 = vpop.eup %1098 }
 0x3b4   : > { %v546_v58 = vmul.f32 %v1099_v54, %v544_v57 }
 0x414   : > { %v549_v55 = vpop.permute.xlu0 %548 }
 0x415   : > { %v551_v56 = vmul.f32 %v1099_v54, %v549_v55 }
 0x417   : > { %553 = vrot.lane.b32.xlu0 %v551_v56, %s1129_s22 }
 0x489   : > { %v554_v59 = vpop.permute.xlu0 %553 }
 0x48a   : > { %v1301_v60 = vadd.f32 %v554_v59, %v546_v58 }
 0x48c   : > { %1100 = vtanh.f32 %v1301_v60 }
 0x499   : > { %v1101_v3 = vpop.eup %1100 }
 0x49a   : > { %559 = vrot.lane.b32.xlu1 %v1101_v3, %s1128_s21 }
 0x49e   : > { %576 = vrot.lane.b32.xlu1 %v574_v5, %s1129_s22 }
 0x4a2   : > { %680 = vrot.lane.b32.xlu1 %v671_v7, %s1129_s22 }
 0x50c   : > { %v560_v8 = vpop.permute.xlu1 %559 }
 0x50d   : > { %v562_v10 = vmul.f32 %v1099_v54, %v560_v8 }
 0x50f   : > { %564 = vrot.lane.b32.xlu0 %v562_v10, %s1129_s22 }
 0x510   : > { %v577_v11 = vpop.permute.xlu1 %576 }
 0x514   : > { %v681_v25 = vpop.permute.xlu1 %680 }
 0x581   : > { %v565_v12 = vpop.permute.xlu0 %564 }
 0x582   : > { %567 = vst.msk [vmem:[#allocation2 + $0x8] sm:$0xff] %vm323_vm2, %v565_v12  ;;  %v579_v13 = vsel %vm323_vm2, %v565_v12, %v577_v11 }
 0x583   : > { %1052 = vmatmul.mubr.msk.f32.vlgmr.msra.gmra.mxu0 %vm459_vm3, %v579_v13 }
 0x643   : > { %v666_v15 = vpop.f32.mrf.mxu0 }
 0x644   : > { %v667_v16 = vadd.f32 %v955_v14, %v666_v15 }
 0x645   : > { %v1053_v17 = vpop.f32.mrf.mxu0 }
 0x646   : > { %1102 = vtanh.f32 %v667_v16  ;;  %v957_v19 = vmul.f32 -1.442695, %v667_v16 }
 0x648   : > { %1104 = vpow2.f32 %v957_v19 }
 0x653   : > { %v1103_v18 = vpop.eup %1102 }
 0x654   : > { %685 = vrot.lane.b32.xlu0 %v1103_v18, %s1128_s21 }
 0x655   : > { %v1105_v20 = vpop.eup %1104 }
 0x656   : > { %v675_v21 = vadd.f32 1.0, %v1105_v20 }
 0x658   : > { %1106 = vrcp.f32 %v675_v21 }
 0x665   : > { %v1107_v22 = vpop.eup %1106 }
 0x666   : > { %v683_v26 = vmul.f32 %v1107_v22, %v681_v25 }
 0x6c6   : > { %v686_v23 = vpop.permute.xlu0 %685 }
 0x6c7   : > { %v688_v24 = vmul.f32 %v1107_v22, %v686_v23 }
 0x6c9   : > { %690 = vrot.lane.b32.xlu0 %v688_v24, %s1129_s22 }
 0x73b   : > { %v691_v27 = vpop.permute.xlu0 %690 }
 0x73c   : > { %v693_v28 = vadd.f32 %v691_v27, %v683_v26 }
 0x73e   : > { %1108 = vtanh.f32 %v693_v28 }
 0x74b   : > { %v1109_v36 = vpop.eup %1108 }
 0x74c   : > { %696 = vrot.lane.b32.xlu1 %v1109_v36, %s1128_s21 }
 0x750   : > { %713 = vrot.lane.b32.xlu1 %v711_v38, %s1129_s22 }
 0x754   : > { %817 = vrot.lane.b32.xlu1 %v808_v40, %s1129_s22 }
 0x7be   : > { %v697_v41 = vpop.permute.xlu1 %696 }
 0x7bf   : > { %v699_v42 = vmul.f32 %v1107_v22, %v697_v41 }
 0x7c1   : > { %701 = vrot.lane.b32.xlu0 %v699_v42, %s1129_s22 }
 0x7c2   : > { %v714_v43 = vpop.permute.xlu1 %713 }
 0x7c6   : > { %v818_v56 = vpop.permute.xlu1 %817 }
 0x833   : > { %v702_v44 = vpop.permute.xlu0 %701 }
 0x834   : > { %704 = vst.msk [vmem:[#allocation2 + $0x10] sm:$0xff] %vm323_vm2, %v702_v44  ;;  %v716_v9 = vsel %vm323_vm2, %v702_v44, %v714_v43 }
 0x835   : > { %1071 = vmatmul.mubr.msk.f32.vlgmr.msra.gmra.mxu1 %vm459_vm3, %v716_v9 }
 0x8f5   : > { %v803_v46 = vpop.f32.mrf.mxu1 }
 0x8f6   : > { %v804_v47 = vadd.f32 %v967_v45, %v803_v46 }
 0x8f7   : > { %v1072_v48 = vpop.f32.mrf.mxu1 }
 0x8f8   : > { %1110 = vtanh.f32 %v804_v47  ;;  %v969_v50 = vmul.f32 -1.442695, %v804_v47 }
 0x8fa   : > { %1112 = vpow2.f32 %v969_v50 }
 0x905   : > { %v1111_v49 = vpop.eup %1110 }
 0x906   : > { %822 = vrot.lane.b32.xlu0 %v1111_v49, %s1128_s21 }
 0x907   : > { %v1113_v51 = vpop.eup %1112 }
 0x908   : > { %v812_v52 = vadd.f32 1.0, %v1113_v51 }
 0x90a   : > { %1114 = vrcp.f32 %v812_v52 }
 0x917   : > { %v1115_v53 = vpop.eup %1114 }
 0x918   : > { %v820_v57 = vmul.f32 %v1115_v53, %v818_v56 }
 0x978   : > { %v823_v54 = vpop.permute.xlu0 %822 }
 0x979   : > { %v825_v55 = vmul.f32 %v1115_v53, %v823_v54 }
 0x97b   : > { %827 = vrot.lane.b32.xlu0 %v825_v55, %s1129_s22 }
 0x97f   : > { %433 = vrot.lane.b32.xlu0 %v1252_v29, %s1130_s25 }
 0x983   : > { %706 = vrot.lane.b32.xlu0 %v693_v28, %s1130_s25 }
 0x9ed   : > { %v828_v58 = vpop.permute.xlu0 %827 }
 0x9ee   : > { %v830_v59 = vadd.f32 %v828_v58, %v820_v57 }
 0x9f0   : > { %1116 = vtanh.f32 %v830_v59  ;;  %843 = vrot.lane.b32.xlu0 %v830_v59, %s1130_s25 }
 0x9f1   : > { %v434_v61 = vpop.permute.xlu0 %433 }
 0x9f2   : > { %436 = vst.msk [vmem:[#allocation3] sm:$0xff] %vm323_vm2, %v434_v61 }
 0x9f5   : > { %v707_v62 = vpop.permute.xlu0 %706 }
 0x9f6   : > { %709 = vst.msk [vmem:[#allocation3 + $0x10] sm:$0xff] %vm323_vm2, %v707_v62 }
 0x9fd   : > { %v1117_v63 = vpop.eup %1116 }
 0x9fe   : > { %833 = vrot.lane.b32.xlu1 %v1117_v63, %s1128_s21 }
 0xa02   : > { %569 = vrot.lane.b32.xlu1 %v1301_v60, %s1130_s25 }
 0xa62   : > { %v844_v29 = vpop.permute.xlu0 %843 }
 0xa63   : > { %846 = vst.msk [vmem:[#allocation3 + $0x18] sm:$0xff] %vm323_vm2, %v844_v29 }
 0xa70   : > { %v834_v0 = vpop.permute.xlu1 %833 }
 0xa71   : > { %v836_v1 = vmul.f32 %v1115_v53, %v834_v0 }
 0xa73   : > { %838 = vrot.lane.b32.xlu1 %v836_v1, %s1129_s22 }
 0xa74   : > { %v570_v2 = vpop.permute.xlu1 %569 }
 0xa75   : > { %572 = vst.msk [vmem:[#allocation3 + $0x8] sm:$0xff] %vm323_vm2, %v570_v2 }
 0xae2   : > { %851 = sbr.rel (%p970_p5) target bundleno = 2799 (0xaef), region = 52 }
 0xae5   : > { %v839_v3 = vpop.permute.xlu1 %838 }
 0xae6   : > { %841 = vst.msk [vmem:[#allocation2 + $0x18] sm:$0xff] %vm323_vm2, %v839_v3  ;;  %847 = vst.msk [vmem:[%s1196_s14] sm:$0xff] %vm323_vm2, %v839_v3 }
 0xae7   : > { %v852_v4 = vld [vmem:[#allocation2] sm:$0xff]  ;;  %v853_v60 = vld [vmem:[#allocation2 + $0x8] sm:$0xff]  ;;  %v854_v5 = vld [vmem:[#allocation2 + $0x10] sm:$0xff] }
 0xae8   : > { %856 = vst.msk [vmem:[%s1444_s7] sm:$0xff] %vm323_vm2, %v852_v4  ;;  %857 = vst.msk [vmem:[%s1444_s7 + $0x8] sm:$0xff] %vm323_vm2, %v853_v60  ;;  %v860_v7 = vld [vmem:[#allocation3] sm:$0xff]  ;;  %v861_v8 = vld [vmem:[#allocation3 + $0x8] sm:$0xff] }
 0xae9   : > { %858 = vst.msk [vmem:[%s1444_s7 + $0x10] sm:$0xff] %vm323_vm2, %v854_v5  ;;  %864 = vst.msk [vmem:[%s1445_s8] sm:$0xff] %vm323_vm2, %v860_v7  ;;  %v862_v10 = vld [vmem:[#allocation3 + $0x10] sm:$0xff]  ;;  %v863_v11 = vld [vmem:[#allocation3 + $0x18] sm:$0xff] }
 0xaea   : > { %865 = vst.msk [vmem:[%s1445_s8 + $0x8] sm:$0xff] %vm323_vm2, %v861_v8  ;;  %866 = vst.msk [vmem:[%s1445_s8 + $0x10] sm:$0xff] %vm323_vm2, %v862_v10 }
 0xaeb   : > { %867 = vst.msk [vmem:[%s1445_s8 + $0x18] sm:$0xff] %vm323_vm2, %v863_v11 }
 0xaed   : > { %v855_v6 = vld [vmem:[#allocation2 + $0x18] sm:$0xff] }
 0xaee   : > { %859 = vst.msk [vmem:[%s1444_s7 + $0x18] sm:$0xff] %vm323_vm2, %v855_v6 }
 0xaef PF: > { %s19_s27 = sadd.s32 1, %s1124_s27  }
 0xaf0   : > { %p16_p6 = scmp.ge.s32.totalorder %s19_s27, 10  }
 0xaf2   :  { %18 = sbr.rel (!%p16_p6) target bundleno = 1 (0x1), region = 108 }

</bundles_post_ra>
